<compile_context>
chip_gen: v7x
topology: tpu7x:2x2x1
jax: 0.10.0
libtpu: 0.0.40
codegen_flags: <defaults>
</compile_context>

<pallas_src>
import jax
import jax.numpy as jnp
from jax.experimental import pallas as pl
from jax.experimental.pallas import tpu as pltpu


def _round_up(x, m):
    return ((x + m - 1) // m) * m


def _llr_kernel(x1_ref, x2_ref, w_ref, bc_ref, pq_ref, out_ref):
    d_hid = w_ref.shape[1]                      # padded hidden dim (mult of 128)

    w = w_ref[...]                              # (D_in_p, D_hid_p)   bf16
    pq = pq_ref[...]                            # (D_hid_p, 2*D_hid_p) bf16
    b = bc_ref[0:1, :]                          # (1, D_hid_p) folded bias, f32
    c = bc_ref[1:2, :]                          # (1, D_hid_p) linear term, f32

    x1 = x1_ref[...]                            # (T, D_in_p) bf16
    x2 = x2_ref[...]

    # tdnn7 with BN pre-folded: bf16 MXU, f32 accumulate.
    # TODO(synk): only the affine part of tdnn7 is applied here (standard
    # x-vector embedding extraction point); confirm no nonlinearity is needed.
    e1 = jnp.dot(x1, w, preferred_element_type=jnp.float32) + b       # (T, H) f32
    e2 = jnp.dot(x2, w, preferred_element_type=jnp.float32) + b       # (T, H) f32

    # Scoring matmuls in bf16 (f32 accumulate); e2@Q is never computed.
    e1b = e1.astype(jnp.bfloat16)
    e2b = e2.astype(jnp.bfloat16)
    e1pq = jnp.dot(e1b, pq, preferred_element_type=jnp.float32)       # (T, 2H)
    e2p = jnp.dot(e2b, pq[:, :d_hid], preferred_element_type=jnp.float32)  # (T, H)

    e1p = e1pq[:, :d_hid]                       # e1 @ P   (lane-aligned slice)
    e1q = e1pq[:, d_hid:]                       # e1 @ Q

    # Fused score: a single cross-lane reduction, all in f32.
    g = e1p * e1 + e2p * e2 + 2.0 * (e1q * e2) + (e1 + e2) * c
    out_ref[...] = jnp.sum(g, axis=-1)[None, :]                       # (1, T)


def prepare_params(params, eps=1e-5, lane=128):
    """One-time parameter transform: fold BN into tdnn7, pad, pack, cast."""
    d_in, d_hid = params["w"].shape
    d_in_p = _round_up(d_in, lane)
    d_hid_p = _round_up(d_hid, lane)

    inv_std = 1.0 / jnp.sqrt(params["bn_var"] + eps)                  # (1, D_in)
    scale = params["bn_gamma"] * inv_std
    shift = params["bn_beta"] - params["bn_mean"] * scale
    w_folded = scale.reshape(-1, 1) * params["w"]                     # (D_in, D_hid)
    b_folded = shift @ params["w"] + params["b"]                      # (1, D_hid)
    c_row = params["c"].reshape(1, -1)                                # (1, D_hid)

    # Zero-pad every parameter to lane-aligned shapes (padding contributes 0).
    w_p = jnp.zeros((d_in_p, d_hid_p), jnp.float32).at[:d_in, :d_hid].set(w_folded)
    b_p = jnp.zeros((1, d_hid_p), jnp.float32).at[:, :d_hid].set(b_folded)
    c_p = jnp.zeros((1, d_hid_p), jnp.float32).at[:, :d_hid].set(c_row)
    P_p = jnp.zeros((d_hid_p, d_hid_p), jnp.float32).at[:d_hid, :d_hid].set(params["P"])
    Q_p = jnp.zeros((d_hid_p, d_hid_p), jnp.float32).at[:d_hid, :d_hid].set(params["Q"])

    bc = jnp.concatenate([b_p, c_p], axis=0).astype(jnp.float32)      # (2, H_p)
    pq = jnp.concatenate([P_p, Q_p], axis=1).astype(jnp.bfloat16)     # (H_p, 2H_p)
    return {
        "w": w_p.astype(jnp.bfloat16),
        "bc": bc,
        "pq": pq,
        "d_in": d_in,
        "d_hid": d_hid,
    }


def _vmem_bytes_estimate(tile_b, d_in_p, d_hid_p):
    x_bytes = 2 * 2 * tile_b * d_in_p * 2            # x1 + x2, double-buffered, bf16
    w_bytes = 2 * d_in_p * d_hid_p * 2               # resident weight (dbl-buffered)
    pq_bytes = 2 * d_hid_p * 2 * d_hid_p * 2
    bc_bytes = 2 * 2 * d_hid_p * 4
    tmp_bytes = 8 * tile_b * d_hid_p * 4             # e1/e2/e1pq/e2p/g temporaries
    out_bytes = 2 * tile_b * 4
    return x_bytes + w_bytes + pq_bytes + bc_bytes + tmp_bytes + out_bytes


def llr_uttex(x1, x2, prep, *, tile_b=None, vmem_limit_bytes=None):
    """LLRUTTEX forward. x1, x2: (B, D_in) float32. Returns (B,) f32 scores."""
    B, d_in = x1.shape
    d_in_p, d_hid_p = prep["w"].shape
    assert d_in == prep["d_in"], "input feature dim does not match parameters"

    # Batch tile: 128 by default (safe on v5e/v6e/v7x; >=2 grid steps when
    # B > 128 so both v7x TensorCores get work).  v6e can profitably take
    # tile_b=256..512 via the kwarg.
    if tile_b is None:
        tile_b = 128 if B >= 128 else _round_up(B, 16)
    tile_b = min(_round_up(tile_b, 16), _round_up(B, 16))
    B_p = _round_up(B, tile_b)
    num_tiles = B_p // tile_b

    # Pad feature dim / batch and cast to bf16 (one fused XLA op per input).
    x1 = jnp.pad(x1, ((0, B_p - B), (0, d_in_p - d_in))).astype(jnp.bfloat16)
    x2 = jnp.pad(x2, ((0, B_p - B), (0, d_in_p - d_in))).astype(jnp.bfloat16)

    if vmem_limit_bytes is None:
        est = _vmem_bytes_estimate(tile_b, d_in_p, d_hid_p)
        if est > 32 * 1024 * 1024:
            vmem_limit_bytes = min(int(est * 1.25), 96 * 1024 * 1024)

    grid_spec = pltpu.PrefetchScalarGridSpec(
        num_scalar_prefetch=0,
        grid=(num_tiles,),
        in_specs=[
            pl.BlockSpec((tile_b, d_in_p), lambda i: (i, 0)),         # x1 tile
            pl.BlockSpec((tile_b, d_in_p), lambda i: (i, 0)),         # x2 tile
            # Resident parameters (constant index_map -> stay in VMEM).
            # TODO(synk): pipeline_mode=pl.Buffered(1) would drop their second
            # buffer; left at the default for lowering safety.
            pl.BlockSpec((d_in_p, d_hid_p), lambda i: (0, 0)),        # folded W (bf16)
            pl.BlockSpec((2, d_hid_p), lambda i: (0, 0)),             # [b'; c]  (f32)
            pl.BlockSpec((d_hid_p, 2 * d_hid_p), lambda i: (0, 0)),   # [P | Q] (bf16)
        ],
        out_specs=pl.BlockSpec((1, tile_b), lambda i: (0, i)),
    )

    out = pl.pallas_call(
        _llr_kernel,
        out_shape=jax.ShapeDtypeStruct((1, B_p), jnp.float32),
        grid_spec=grid_spec,
        compiler_params=pltpu.CompilerParams(
            dimension_semantics=("parallel",),
            vmem_limit_bytes=vmem_limit_bytes,
        ),
    )(x1, x2, prep["w"], prep["bc"], prep["pq"])
    return out[0, :B]                                                 # (B,)


def _reference(x1, x2, p):
    inv_std = 1.0 / jnp.sqrt(p["bn_var"] + 1e-5)
    scale = p["bn_gamma"] * inv_std
    shift = p["bn_beta"] - p["bn_mean"] * scale
    e1 = (x1 * scale + shift) @ p["w"] + p["b"]
    e2 = (x2 * scale + shift) @ p["w"] + p["b"]
    quad = lambda a, M, b: jnp.sum((a @ M) * b, axis=-1)
    within = quad(e1, p["P"], e1) + quad(e2, p["P"], e2)
    bet = 2.0 * quad(e1, p["Q"], e2)
    oned = jnp.squeeze((e1 + e2) @ p["c"], axis=-1)
    return within + bet + oned


if __name__ == "__main__":
    B, D_IN, D_HID = 8, 32, 32
    key = jax.random.PRNGKey(0)
    ks = jax.random.split(key, 10)

    x1 = jax.random.normal(ks[0], (B, D_IN), jnp.float32)
    x2 = jax.random.normal(ks[1], (B, D_IN), jnp.float32)

    # Deterministic synthetic parameters (shapes implied by the module).
    params = {
        "bn_gamma": jax.random.normal(ks[2], (1, D_IN), jnp.float32) * 0.1 + 1.0,
        "bn_beta":  jax.random.normal(ks[3], (1, D_IN), jnp.float32) * 0.1,
        "bn_mean":  jax.random.normal(ks[4], (1, D_IN), jnp.float32) * 0.1,
        "bn_var":   jnp.abs(jax.random.normal(ks[5], (1, D_IN), jnp.float32)) + 0.5,
        # tdnn7 weight stored pre-transposed: (D_in, D_hid)
        "w": jax.random.normal(ks[6], (D_IN, D_HID), jnp.float32) / jnp.sqrt(D_IN),
        "b": jax.random.normal(ks[7], (1, D_HID), jnp.float32) * 0.1,
        "P": jax.random.normal(ks[8], (D_HID, D_HID), jnp.float32) / D_HID,
        "Q": jax.random.normal(ks[9], (D_HID, D_HID), jnp.float32) / D_HID,
        "c": jax.random.normal(ks[0], (D_HID, 1), jnp.float32) / jnp.sqrt(D_HID),
    }

    prep = prepare_params(params)                        # one-time param transform
    out = jax.block_until_ready(llr_uttex(x1, x2, prep))
    ref = _reference(x1, x2, params)
    assert out.shape == (B,)
    # Looser tolerance: MXU operands are bf16 (f32 accumulation).
    assert jnp.allclose(out, ref, rtol=5e-2, atol=5e-2), (out, ref)
    print("KERNEL_OK")
</pallas_src>

<mosaic_0001>
module attributes {stable_mosaic.version = 11 : i64} {
  func.func @_llr_kernel(%arg0: i32, %arg1: memref<16x128xbf16, #tpu.memory_space<vmem>>, %arg2: memref<16x128xbf16, #tpu.memory_space<vmem>>, %arg3: memref<128x128xbf16, #tpu.memory_space<vmem>>, %arg4: memref<2x128xf32, #tpu.memory_space<vmem>>, %arg5: memref<128x256xbf16, #tpu.memory_space<vmem>>, %arg6: memref<1x16xf32, #tpu.memory_space<vmem>>) attributes {dimension_semantics = [#tpu.dimension_semantics<parallel>], iteration_bounds = array<i64: 1>, scalar_prefetch = 0 : i64, scratch_operands = 0 : i64, tpu.core_type = #tpu.core_type<tc>, window_params = [{transform_indices = @transform_0, window_bounds = array<i64: 16, 128>}, {transform_indices = @transform_1, window_bounds = array<i64: 16, 128>}, {pipeline_mode = #tpu.pipeline_mode<synchronous>, transform_indices = @transform_2, window_bounds = array<i64: 128, 128>}, {pipeline_mode = #tpu.pipeline_mode<synchronous>, transform_indices = @transform_3, window_bounds = array<i64: 2, 128>}, {pipeline_mode = #tpu.pipeline_mode<synchronous>, transform_indices = @transform_4, window_bounds = array<i64: 128, 256>}, {transform_indices = @transform_5, window_bounds = array<i64: 1, 16>}]} {
    %c0 = arith.constant 0 : index
    %c0_0 = arith.constant 0 : index
    %0 = vector.load %arg3[%c0, %c0_0] : memref<128x128xbf16, #tpu.memory_space<vmem>>, vector<128x128xbf16>
    %c0_1 = arith.constant 0 : index
    %c0_2 = arith.constant 0 : index
    %1 = vector.load %arg5[%c0_1, %c0_2] : memref<128x256xbf16, #tpu.memory_space<vmem>>, vector<128x256xbf16>
    %c0_3 = arith.constant 0 : index
    %c0_4 = arith.constant 0 : index
    %2 = vector.load %arg4[%c0_3, %c0_4] : memref<2x128xf32, #tpu.memory_space<vmem>>, vector<1x128xf32>
    %c1 = arith.constant 1 : index
    %c0_5 = arith.constant 0 : index
    %3 = vector.load %arg4[%c1, %c0_5] : memref<2x128xf32, #tpu.memory_space<vmem>>, vector<1x128xf32>
    %c0_6 = arith.constant 0 : index
    %c0_7 = arith.constant 0 : index
    %4 = vector.load %arg1[%c0_6, %c0_7] : memref<16x128xbf16, #tpu.memory_space<vmem>>, vector<16x128xbf16>
    %c0_8 = arith.constant 0 : index
    %c0_9 = arith.constant 0 : index
    %5 = vector.load %arg2[%c0_8, %c0_9] : memref<16x128xbf16, #tpu.memory_space<vmem>>, vector<16x128xbf16>
    %cst = arith.constant dense<0.000000e+00> : vector<16x128xf32>
    %6 = tpu.matmul %4, %0, %cst {dimension_numbers = #tpu.dot_dimension_numbers<[1], [0], [0], [1], [0, 0, 1, 1], [], []>} : vector<16x128xbf16>, vector<128x128xbf16>, vector<16x128xf32> -> vector<16x128xf32>
    %7 = vector.broadcast %2 : vector<1x128xf32> to vector<16x128xf32>
    %8 = arith.addf %6, %7 : vector<16x128xf32>
    %cst_10 = arith.constant dense<0.000000e+00> : vector<16x128xf32>
    %9 = tpu.matmul %5, %0, %cst_10 {dimension_numbers = #tpu.dot_dimension_numbers<[1], [0], [0], [1], [0, 0, 1, 1], [], []>} : vector<16x128xbf16>, vector<128x128xbf16>, vector<16x128xf32> -> vector<16x128xf32>
    %10 = vector.broadcast %2 : vector<1x128xf32> to vector<16x128xf32>
    %11 = arith.addf %9, %10 : vector<16x128xf32>
    %12 = arith.truncf %8 : vector<16x128xf32> to vector<16x128xbf16>
    %13 = arith.truncf %11 : vector<16x128xf32> to vector<16x128xbf16>
    %cst_11 = arith.constant dense<0.000000e+00> : vector<16x256xf32>
    %14 = tpu.matmul %12, %1, %cst_11 {dimension_numbers = #tpu.dot_dimension_numbers<[1], [0], [0], [1], [0, 0, 1, 1], [], []>} : vector<16x128xbf16>, vector<128x256xbf16>, vector<16x256xf32> -> vector<16x256xf32>
    %15 = vector.extract_strided_slice %1 {offsets = [0, 0], sizes = [128, 128], strides = [1, 1]} : vector<128x256xbf16> to vector<128x128xbf16>
    %cst_12 = arith.constant dense<0.000000e+00> : vector<16x128xf32>
    %16 = tpu.matmul %13, %15, %cst_12 {dimension_numbers = #tpu.dot_dimension_numbers<[1], [0], [0], [1], [0, 0, 1, 1], [], []>} : vector<16x128xbf16>, vector<128x128xbf16>, vector<16x128xf32> -> vector<16x128xf32>
    %17 = vector.extract_strided_slice %14 {offsets = [0, 0], sizes = [16, 128], strides = [1, 1]} : vector<16x256xf32> to vector<16x128xf32>
    %18 = vector.extract_strided_slice %14 {offsets = [0, 128], sizes = [16, 128], strides = [1, 1]} : vector<16x256xf32> to vector<16x128xf32>
    %19 = arith.mulf %17, %8 : vector<16x128xf32>
    %20 = arith.mulf %16, %11 : vector<16x128xf32>
    %21 = arith.addf %19, %20 : vector<16x128xf32>
    %22 = arith.mulf %18, %11 : vector<16x128xf32>
    %cst_13 = arith.constant 2.000000e+00 : f32
    %23 = vector.broadcast %cst_13 : f32 to vector<16x128xf32>
    %24 = arith.mulf %23, %22 : vector<16x128xf32>
    %25 = arith.addf %21, %24 : vector<16x128xf32>
    %26 = arith.addf %8, %11 : vector<16x128xf32>
    %27 = vector.broadcast %3 : vector<1x128xf32> to vector<16x128xf32>
    %28 = arith.mulf %26, %27 : vector<16x128xf32>
    %29 = arith.addf %25, %28 : vector<16x128xf32>
    %cst_14 = arith.constant dense<0.000000e+00> : vector<16xf32>
    %30 = vector.multi_reduction <add>, %29, %cst_14 [1] : vector<16x128xf32> to vector<16xf32>
    %31 = vector.shape_cast %30 : vector<16xf32> to vector<1x16xf32>
    %c0_15 = arith.constant 0 : index
    %c0_16 = arith.constant 0 : index
    %32 = vector.load %arg6[%c0_15, %c0_16] : memref<1x16xf32, #tpu.memory_space<vmem>>, vector<1x16xf32>
    tpu.vector_store %arg6[%c0_15, %c0_16], %31 {strides = array<i32>} : memref<1x16xf32, #tpu.memory_space<vmem>>, vector<1x16xf32>,
    return
  }
  func.func @transform_0(%arg0: i32) -> (i32, i32) {
    %c0_i32 = arith.constant 0 : i32
    %c0_i32_0 = arith.constant 0 : i32
    return %arg0, %c0_i32 : i32, i32
  }
  func.func @transform_1(%arg0: i32) -> (i32, i32) {
    %c0_i32 = arith.constant 0 : i32
    %c0_i32_0 = arith.constant 0 : i32
    return %arg0, %c0_i32 : i32, i32
  }
  func.func @transform_2(%arg0: i32) -> (i32, i32) {
    %c0_i32 = arith.constant 0 : i32
    %c0_i32_0 = arith.constant 0 : i32
    %c0_i32_1 = arith.constant 0 : i32
    return %c0_i32, %c0_i32_0 : i32, i32
  }
  func.func @transform_3(%arg0: i32) -> (i32, i32) {
    %c0_i32 = arith.constant 0 : i32
    %c0_i32_0 = arith.constant 0 : i32
    %c0_i32_1 = arith.constant 0 : i32
    return %c0_i32, %c0_i32_0 : i32, i32
  }
  func.func @transform_4(%arg0: i32) -> (i32, i32) {
    %c0_i32 = arith.constant 0 : i32
    %c0_i32_0 = arith.constant 0 : i32
    %c0_i32_1 = arith.constant 0 : i32
    return %c0_i32, %c0_i32_0 : i32, i32
  }
  func.func @transform_5(%arg0: i32) -> (i32, i32) {
    %c0_i32 = arith.constant 0 : i32
    %c0_i32_0 = arith.constant 0 : i32
    return %c0_i32, %arg0 : i32, i32
  }
}

</mosaic_0001>

<bundles_post_ra>
// kernel: tpu_custom_call.1
= control target key start
LH: loop header
LB: loop body
LE: loop exit
PB: predicated region body
PF: predicated region fallthrough
CT: control target
= control target key end

     0   :  { %10 = vsyncpa [#allocation3], 0  ;;  %s928_s0 = inlined_call_operand.hbm [shape: bf16[16,128], index: 0, kind: input, shape index: {}]   ;;  %s929_s1 = inlined_call_operand.hbm [shape: bf16[16,128], index: 1, kind: input, shape index: {}]   ;;  %s930_s2 = inlined_call_operand.hbm [shape: bf16[128,128], index: 2, kind: input, shape index: {}]   ;;  %s931_s3 = inlined_call_operand.vmem [shape: f32[2,128], index: 3, kind: input, shape index: {}]   ;;  %s932_s4 = inlined_call_operand.hbm [shape: bf16[128,256], index: 4, kind: input, shape index: {}]   ;;  %s933_s5 = inlined_call_operand.hbm [shape: f32[1,16], index: 5, kind: output, shape index: {}]  }
   0x1   :  { %11 = vsyncpa [#allocation6], 0 }
   0x2   :  { %12 = vsyncpa [#allocation9], 0 }
   0x3   :  { %13 = vsyncpa [#allocation4], 0  ;;  %s767_s18 = smov [#allocation5]   ;;  %s768_s20 = smov [#allocation2]  }
   0x4   :  { %s31_s19 = sshll.u32 %s767_s18, 4  ;;  %s19_s21 = sshll.u32 %s768_s20, 4  ;;  %s32_s19 = int_to_ptr.vmem [resolvable:$true] %s31_s19  ;;  %s809_s21 = int_to_ptr.vmem [resolvable:$true] %s19_s21 }
   0x5   :  { %s649_s24 = scalar_lea.hbm %s929_s1, 128 }
   0x6   :  { %p650_p0 = scmp.ne.s32.totalorder %s929_s1, %s649_s24  ;;  %p653_p1 = scmp.lt.u32.totalorder %s649_s24, %s929_s1 }
   0x8   :  { %p655_p2 = pnand %p653_p1, %p650_p0 }
   0xa   :  { %658 = shalt.err (!%p655_p2)
}
   0xb   :  { %s659_s29 = scalar_lea.vmem %s32_s19, 128  ;;  %p664_p4 = scmp.lt.s32.totalorder %s32_s19, %s32_s19 }
   0xc   :  { %p660_p3 = scmp.ne.s32.totalorder %s32_s19, %s659_s29  ;;  %p665_p5 = scmp.lt.s32.totalorder %s659_s29, %s659_s29 }
   0xe   :  { %p666_p6 = por %p665_p5, %p664_p4 }
  0x10   :  { %p667_p7 = pnand %p666_p6, %p660_p3 }
  0x12   :  { %670 = shalt.err (!%p667_p7)
}
  0x13   :  { %s769_s30 = smov 64   ;;  %s770_s6 = smov 4  }
  0x14   :  { %37 = dma.hbm_to_vmem [thread:$0]  %s929_s1, 128, %s32_s19, [#allocation6], %s769_s30, %s769_s30, %s770_s6  }
  0x15   :  { %s671_s11 = scalar_lea.hbm %s928_s0, 128 }
  0x16   :  { %p672_p8 = scmp.ne.s32.totalorder %s928_s0, %s671_s11  ;;  %p675_p9 = scmp.lt.u32.totalorder %s671_s11, %s928_s0 }
  0x18   :  { %p677_p10 = pnand %p675_p9, %p672_p8 }
  0x1a   :  { %680 = shalt.err (!%p677_p10)
}
  0x1b   :  { %s681_s16 = scalar_lea.vmem %s809_s21, 128  ;;  %p686_p12 = scmp.lt.s32.totalorder %s809_s21, %s809_s21 }
  0x1c   :  { %p682_p11 = scmp.ne.s32.totalorder %s809_s21, %s681_s16  ;;  %p687_p13 = scmp.lt.s32.totalorder %s681_s16, %s681_s16 }
  0x1e   :  { %p688_p0 = por %p687_p13, %p686_p12 }
  0x20   :  { %p689_p1 = pnand %p688_p0, %p682_p11 }
  0x22   :  { %692 = shalt.err (!%p689_p1)
}
  0x23   :  { %25 = dma.hbm_to_vmem [thread:$0]  %s928_s0, 128, %s809_s21, [#allocation3], %s769_s30, %s769_s30, %s770_s6  }
  0x24   :  { %s771_s18 = smov [#allocation7]   ;;  %s772_s20 = smov [#allocation8]  }
  0x25   :  { %s43_s19 = sshll.u32 %s771_s18, 4  ;;  %s57_s22 = sshll.u32 %s772_s20, 4  ;;  %s44_s19 = int_to_ptr.vmem [resolvable:$true] %s43_s19  ;;  %s846_s22 = int_to_ptr.vmem [resolvable:$true] %s57_s22 }
  0x26   :  { %s693_s25 = scalar_lea.hbm %s930_s2, 1024 }
  0x27   :  { %p694_p2 = scmp.ne.s32.totalorder %s930_s2, %s693_s25  ;;  %p697_p3 = scmp.lt.u32.totalorder %s693_s25, %s930_s2 }
  0x29   :  { %p699_p4 = pnand %p697_p3, %p694_p2 }
  0x2b   :  { %702 = shalt.err (!%p699_p4)
}
  0x2c   :  { %s703_s0 = scalar_lea.vmem %s44_s19, 1024  ;;  %p708_p6 = scmp.lt.s32.totalorder %s44_s19, %s44_s19 }
  0x2d   :  { %p704_p5 = scmp.ne.s32.totalorder %s44_s19, %s703_s0  ;;  %p709_p7 = scmp.lt.s32.totalorder %s703_s0, %s703_s0 }
  0x2f   :  { %p710_p8 = por %p709_p7, %p708_p6 }
  0x31   :  { %p711_p9 = pnand %p710_p8, %p704_p5 }
  0x33   :  { %714 = shalt.err (!%p711_p9)
}
  0x34   :  { %49 = dma.hbm_to_vmem [thread:$0]  %s930_s2, 1024, %s44_s19, [#allocation6], %s769_s30, %s769_s30, %s770_s6  }
  0x35   :  { %s715_s10 = scalar_lea.hbm %s932_s4, 2048 }
  0x36   :  { %p716_p10 = scmp.ne.s32.totalorder %s932_s4, %s715_s10  ;;  %p719_p11 = scmp.lt.u32.totalorder %s715_s10, %s932_s4 }
  0x38   :  { %p721_p12 = pnand %p719_p11, %p716_p10 }
  0x3a   :  { %724 = shalt.err (!%p721_p12)
}
  0x3b   :  { %s725_s15 = scalar_lea.vmem %s846_s22, 2048  ;;  %p730_p0 = scmp.lt.s32.totalorder %s846_s22, %s846_s22 }
  0x3c   :  { %p726_p13 = scmp.ne.s32.totalorder %s846_s22, %s725_s15  ;;  %p731_p1 = scmp.lt.s32.totalorder %s725_s15, %s725_s15 }
  0x3e   :  { %p732_p2 = por %p731_p1, %p730_p0 }
  0x40   :  { %p733_p3 = pnand %p732_p2, %p726_p13 }
  0x42   :  { %736 = shalt.err (!%p733_p3)
}
  0x43   :  { %s773_s2 = smov 128   ;;  %s774_s30 = smov 8  }
  0x44   :  { %63 = dma.hbm_to_vmem [thread:$0]  %s932_s4, 2048, %s846_s22, [#allocation9], %s773_s2, %s773_s2, %s774_s30  }
  0x45   :  { %759 = dma.done.wait [#allocation3], 128  }
  0x46   :  { %760 = vsyncadd [#allocation3], 4294967168 }
  0x47   :  { %761 = dma.done.wait [#allocation6], 1152  }
  0x48   :  { %762 = vsyncadd [#allocation6], 4294966144 }
  0x49   :  { %763 = dma.done.wait [#allocation9], 2048  }
  0x4a   :  { %764 = vsyncadd [#allocation9], 4294965248  ;;  %v775_v0 = vmov 0.0   ;;  %vm776_vm0 = vmmov 0   ;;  %v615_v1 = vld [vmem:[#allocation7] sm:$0xff]   ;;  %v616_v2 = vld [vmem:[#allocation7 + $0x8] sm:$0xff]  }
  0x4b   :  { %543 = vmatprep.subr.bf16.mxu0 %v775_v0  ;;  %563 = vmatprep.subr.bf16.mxu1 %v775_v0  ;;  %v617_v3 = vld [vmem:[#allocation7 + $0x10] sm:$0xff]   ;;  %v618_v4 = vld [vmem:[#allocation7 + $0x18] sm:$0xff]   ;;  %v619_v5 = vld [vmem:[#allocation7 + $0x20] sm:$0xff]   ;;  %v777_v27 = vmov 0   ;;  %vm466_vm1 = vcmask 130112   ;;  %vm469_vm2 = vcmask 122880  }
  0x4c   :  { %559 = vmatprep.mubr.msk.bf16.mxu0 %vm776_vm0, %v775_v0  ;;  %579 = vmatprep.mubr.msk.bf16.mxu1 %vm776_vm0, %v775_v0  ;;  %v620_v6 = vld [vmem:[#allocation7 + $0x28] sm:$0xff]   ;;  %v621_v7 = vld [vmem:[#allocation7 + $0x30] sm:$0xff]   ;;  %v622_v8 = vld [vmem:[#allocation7 + $0x38] sm:$0xff]  }
  0x4d   :  { %544 = vmatpush3.bf16.msra.mxu0 %v615_v1  ;;  %564 = vmatpush3.bf16.msra.mxu1 %v615_v1  ;;  %v627_v9 = vld [vmem:[#allocation8 + $0x4] ss:$8 sps:$4 sm:$0xff]   ;;  %v623_v10 = vld [vmem:[#allocation2] sm:$0xff]   ;;  %v624_v11 = vld [vmem:[#allocation5] sm:$0xff]  }
  0x4e   :  { %545 = vmatprep.subr.bf16.mxu0 %v775_v0  ;;  %565 = vmatprep.subr.bf16.mxu1 %v775_v0  ;;  %v625_v12 = vld [vmem:[#allocation8] ss:$8 sps:$4 sm:$0xff]   ;;  %v630_v13 = vld [vmem:[#allocation8 + $0x14] ss:$8 sps:$4 sm:$0xff]   ;;  %v628_v14 = vld [vmem:[#allocation8 + $0x10] ss:$8 sps:$4 sm:$0xff]  }
  0x4f   :  { %v633_v15 = vld [vmem:[#allocation8 + $0x24] ss:$8 sps:$4 sm:$0xff]   ;;  %v631_v16 = vld [vmem:[#allocation8 + $0x20] ss:$8 sps:$4 sm:$0xff]   ;;  %v636_v17 = vld [vmem:[#allocation8 + $0x34] ss:$8 sps:$4 sm:$0xff]  }
  0x50   :  { %v634_v18 = vld [vmem:[#allocation8 + $0x30] ss:$8 sps:$4 sm:$0xff]   ;;  %v639_v19 = vld [vmem:[#allocation8 + $0x44] ss:$8 sps:$4 sm:$0xff]   ;;  %v637_v20 = vld [vmem:[#allocation8 + $0x40] ss:$8 sps:$4 sm:$0xff]  }
  0x51   :  { %546 = vmatpush3.bf16.msra.mxu0 %v616_v2  ;;  %566 = vmatpush3.bf16.msra.mxu1 %v616_v2  ;;  %v642_v21 = vld [vmem:[#allocation8 + $0x54] ss:$8 sps:$4 sm:$0xff]   ;;  %v640_v22 = vld [vmem:[#allocation8 + $0x50] ss:$8 sps:$4 sm:$0xff]   ;;  %v645_v23 = vld [vmem:[#allocation8 + $0x64] ss:$8 sps:$4 sm:$0xff]  }
  0x52   :  { %547 = vmatprep.subr.bf16.mxu0 %v775_v0  ;;  %567 = vmatprep.subr.bf16.mxu1 %v775_v0  ;;  %v643_v24 = vld [vmem:[#allocation8 + $0x60] ss:$8 sps:$4 sm:$0xff]   ;;  %v648_v25 = vld [vmem:[#allocation8 + $0x74] ss:$8 sps:$4 sm:$0xff]   ;;  %v646_v26 = vld [vmem:[#allocation8 + $0x70] ss:$8 sps:$4 sm:$0xff]  }
  0x53   :  { %v488_v28 = vld [vmem:[%s931_s3] ss:$0 sm:$0xff]  ;;  %v515_v58 = vld [vmem:[%s931_s3 + $0x1] ss:$0 sm:$0xff]  ;;  %s778_s3 = smov [#allocation10]  }
  0x54   :  { %s477_s19 = sshll.u32 %s778_s3, 4  ;;  %s478_s19 = int_to_ptr.vmem [resolvable:$true] %s477_s19 }
  0x55   :  { %548 = vmatpush3.bf16.msra.mxu0 %v617_v3  ;;  %568 = vmatpush3.bf16.msra.mxu1 %v617_v3  ;;  %s737_s20 = scalar_lea.vmem %s478_s19, 16  ;;  %s741_s22 = scalar_lea.vmem %s478_s19, 32 }
  0x56   :  { %549 = vmatprep.subr.bf16.mxu0 %v775_v0  ;;  %569 = vmatprep.subr.bf16.mxu1 %v775_v0  ;;  %p738_p4 = scmp.ne.s32.totalorder %s478_s19, %s737_s20  ;;  %p742_p5 = scmp.lt.s32.totalorder %s478_s19, %s478_s19 }
  0x57   :  { %p743_p6 = scmp.lt.s32.totalorder %s741_s22, %s737_s20 }
  0x59   :  { %550 = vmatpush3.bf16.msra.mxu0 %v618_v4  ;;  %570 = vmatpush3.bf16.msra.mxu1 %v618_v4  ;;  %p744_p7 = por %p743_p6, %p742_p5 }
  0x5a   :  { %551 = vmatprep.subr.bf16.mxu0 %v775_v0  ;;  %571 = vmatprep.subr.bf16.mxu1 %v775_v0 }
  0x5b   :  { %p745_p8 = pnand %p744_p7, %p738_p4 }
  0x5d   :  { %552 = vmatpush3.bf16.msra.mxu0 %v619_v5  ;;  %572 = vmatpush3.bf16.msra.mxu1 %v619_v5 }
  0x5e   :  { %553 = vmatprep.subr.bf16.mxu0 %v775_v0  ;;  %573 = vmatprep.subr.bf16.mxu1 %v775_v0 }
  0x61   :  { %554 = vmatpush3.bf16.msra.mxu0 %v620_v6  ;;  %574 = vmatpush3.bf16.msra.mxu1 %v620_v6  ;;  %v455_v6 = vlaneseq }
  0x62   :  { %555 = vmatprep.subr.bf16.mxu0 %v775_v0  ;;  %575 = vmatprep.subr.bf16.mxu1 %v775_v0 }
  0x65   :  { %556 = vmatpush3.bf16.msra.mxu0 %v621_v7  ;;  %576 = vmatpush3.bf16.msra.mxu1 %v621_v7  ;;  %v456_v7 = vand.u32 127, %v455_v6 }
  0x66   :  { %557 = vmatprep.subr.bf16.mxu0 %v775_v0  ;;  %577 = vmatprep.subr.bf16.mxu1 %v775_v0 }
  0x69   :  { %558 = vmatpush3.bf16.msra.mxu0 %v622_v8  ;;  %578 = vmatpush3.bf16.msra.mxu1 %v622_v8  ;;  %v458_v8 = vshrl.u32 %v455_v6, 7 }
  0x6a   :  { %343 = vmatprep.subr.bf16.mxu0 %v627_v9  ;;  %583 = vmatprep.subr.bf16.mxu1 %v775_v0  ;;  %v461_v9 = vadd.s32 4294967288, %v456_v7 }
  0x6c   :  { %560 = vmatmul.mubr.bf16.vlgmr.msra.gmra.mrb[0].mxu0 %v623_v10  ;;  %580 = vmatmul.mubr.bf16.vlgmr.msra.gmra.mrb[0].mxu1 %v624_v11  ;;  %v459_v11 = vsub.s32 %v456_v7, %v458_v8 }
  0x6d   :  { %344 = vmatpush1.bf16.msra.mxu0 %v625_v12  ;;  %584 = vmatpush3.bf16.msra.mxu1 %v625_v12  ;;  %v464_v12 = vsub.s32 %v461_v9, %v458_v8 }
  0x6e   :  { %345 = vmatprep.subr.bf16.mxu0 %v630_v13  ;;  %585 = vmatprep.subr.bf16.mxu1 %v775_v0 }
  0x6f   :  { %599 = vmatprep.mubr.msk.bf16.mxu1 %vm776_vm0, %v775_v0  ;;  %375 = vmatprep.mubr.bf16.mxu0 %v777_v27 }
  0x71   :  { %346 = vmatpush1.bf16.msra.mxu0 %v628_v14  ;;  %586 = vmatpush3.bf16.msra.mxu1 %v628_v14 }
  0x72   :  { %347 = vmatprep.subr.bf16.mxu0 %v633_v15  ;;  %587 = vmatprep.subr.bf16.mxu1 %v775_v0 }
  0x75   :  { %348 = vmatpush1.bf16.msra.mxu0 %v631_v16  ;;  %588 = vmatpush3.bf16.msra.mxu1 %v631_v16 }
  0x76   :  { %349 = vmatprep.subr.bf16.mxu0 %v636_v17  ;;  %589 = vmatprep.subr.bf16.mxu1 %v775_v0 }
  0x79   :  { %350 = vmatpush1.bf16.msra.mxu0 %v634_v18  ;;  %590 = vmatpush3.bf16.msra.mxu1 %v634_v18 }
  0x7a   :  { %351 = vmatprep.subr.bf16.mxu0 %v639_v19  ;;  %591 = vmatprep.subr.bf16.mxu1 %v775_v0 }
  0x7d   :  { %352 = vmatpush1.bf16.msra.mxu0 %v637_v20  ;;  %592 = vmatpush3.bf16.msra.mxu1 %v637_v20 }
  0x7e   :  { %353 = vmatprep.subr.bf16.mxu0 %v642_v21  ;;  %593 = vmatprep.subr.bf16.mxu1 %v775_v0 }
  0x81   :  { %354 = vmatpush1.bf16.msra.mxu0 %v640_v22  ;;  %594 = vmatpush3.bf16.msra.mxu1 %v640_v22 }
  0x82   :  { %355 = vmatprep.subr.bf16.mxu0 %v645_v23  ;;  %595 = vmatprep.subr.bf16.mxu1 %v775_v0 }
  0x85   :  { %356 = vmatpush1.bf16.msra.mxu0 %v643_v24  ;;  %596 = vmatpush3.bf16.msra.mxu1 %v643_v24 }
  0x86   :  { %597 = vmatprep.subr.bf16.mxu1 %v775_v0  ;;  %357 = vmatprep.subr.bf16.mxu0 %v648_v25 }
  0x89   :  { %358 = vmatpush1.bf16.msra.mxu0 %v646_v26  ;;  %598 = vmatpush3.bf16.msra.mxu1 %v646_v26 }
 0x13f   :  { %v207_v29 = vpop.f32.mrb[0].mxu0  ;;  %v254_v30 = vpop.f32.mrb[0].mxu1 }
 0x140   :  { %v561_v31 = vpop.f32.mrb[1].mxu0  ;;  %v581_v32 = vpop.f32.mrb[1].mxu1  ;;  %v208_v35 = vadd.f32 %v488_v28, %v207_v29  ;;  %v255_v36 = vadd.f32 %v488_v28, %v254_v30 }
 0x141   :  { %v210_v33 = vpop.f32.mrb[2].mxu0  ;;  %v257_v34 = vpop.f32.mrb[2].mxu1 }
 0x142   :  { %v211_v37 = vadd.f32 %v488_v28, %v210_v33  ;;  %v258_v38 = vadd.f32 %v488_v28, %v257_v34  ;;  %v562_v39 = vpop.f32.mrb[3].mxu0  ;;  %v582_v40 = vpop.f32.mrb[3].mxu1  ;;  %v439_v52 = vadd.f32 %v255_v36, %v208_v35 }
 0x144   :  { %v261_v41 = vpack.c.bf16 %v211_v37, %v208_v35  ;;  %v262_v42 = vpack.c.bf16 %v258_v38, %v255_v36  ;;  %v445_v0 = vmul.f32 %v515_v58, %v439_v52  ;;  %v440_v1 = vadd.f32 %v258_v38, %v211_v37 }
 0x146   :  { %376 = vmatmul.mubr.bf16.vlgmr.msra.gmra.mrb[4].mxu0 %v261_v41  ;;  %600 = vmatmul.mubr.bf16.vlgmr.msra.gmra.mrb[4].mxu1 %v262_v42  ;;  %v446_v4 = vmul.f32 %v515_v58, %v440_v1 }
 0x219   :  { %v377_v43 = vpop.f32.mrb[4].mxu0  ;;  %v420_v44 = vpop.f32.mrb[4].mxu1 }
 0x21a   :  { %v427_v45 = vmul.f32 %v377_v43, %v208_v35  ;;  %v429_v46 = vmul.f32 %v420_v44, %v255_v36  ;;  %v379_v47 = vpop.f32.mrb[5].mxu0  ;;  %v601_v48 = vpop.f32.mrb[5].mxu1 }
 0x21b   :  { %v433_v49 = vmul.f32 %v379_v47, %v255_v36  ;;  %v381_v50 = vpop.f32.mrb[6].mxu0  ;;  %v423_v51 = vpop.f32.mrb[6].mxu1 }
 0x21c   :  { %v431_v53 = vadd.f32 %v429_v46, %v427_v45  ;;  %v428_v54 = vmul.f32 %v381_v50, %v211_v37  ;;  %v430_v55 = vmul.f32 %v423_v51, %v258_v38  ;;  %v383_v56 = vpop.f32.mrb[7].mxu0  ;;  %v602_v57 = vpop.f32.mrb[7].mxu1 }
 0x21d   :  { %v435_v59 = vmul.f32 2.0, %v433_v49  ;;  %v434_v60 = vmul.f32 %v383_v56, %v258_v38 }
 0x21e   :  { %v432_v61 = vadd.f32 %v430_v55, %v428_v54 }
 0x21f   :  { %v436_v62 = vmul.f32 2.0, %v434_v60  ;;  %v437_v63 = vadd.f32 %v435_v59, %v431_v53 }
 0x221   :  { %v438_v2 = vadd.f32 %v436_v62, %v432_v61  ;;  %v447_v3 = vadd.f32 %v445_v0, %v437_v63 }
 0x223   :  { %449 = vadd.xlane.f32.xlu0 %v447_v3  ;;  %v448_v5 = vadd.f32 %v446_v4, %v438_v2 }
 0x227   :  { %451 = vadd.xlane.f32.xlu0 %v448_v5 }
 0x2b0   :  { %v450_v10 = vpop.xlane.xlu0 %449 }
 0x2b1   :  { %v460_v14 = vrot.slane %v450_v10, %v459_v11 }
 0x2b4   :  { %v452_v13 = vpop.xlane.xlu0 %451 }
 0x2b5   :  { %v465_v15 = vrot.slane %v452_v13, %v464_v12 }
 0x2b7   :  { %v467_v16 = vsel %vm466_vm1, %v465_v15, %v460_v14 }
 0x2b8   :  { %470 = vst.msk [vmem:[#allocation10] sm:$0x1] %vm469_vm2, %v467_v16 }
 0x2b9   :  { %748 = shalt.err (!%p745_p8)
}
 0x2ba   :  { %s749_s25 = scalar_lea.hbm %s933_s5, 16 }
 0x2bb   :  { %p750_p9 = scmp.ne.s32.totalorder %s933_s5, %s749_s25  ;;  %p753_p10 = scmp.lt.u32.totalorder %s749_s25, %s933_s5 }
 0x2bd   :  { %p755_p11 = pnand %p753_p10, %p750_p9 }
 0x2bf   :  { %758 = shalt.err (!%p755_p11)
}
 0x2c0   :  { %480 = dma.vmem_to_hbm [thread:$0]  %s478_s19, 16, %s933_s5, [#allocation4]  }
 0x2c1   :  { %765 = dma.done.wait [#allocation4], 16  }
 0x2c2   :  { %766 = vsyncadd [#allocation4], 4294967280 }
 0x2c3   :  { %484 = vsyncpa [#allocation3], 1 }
 0x2c4   :  { %485 = vsyncpa [#allocation6], 1 }
 0x2c5   :  { %486 = vsyncpa [#allocation9], 1 }
 0x2c6   :  { %487 = vsyncpa [#allocation4], 1 }

</bundles_post_ra>
